<compile_context>
chip_gen: v5e
topology: v5e:2x2
jax: 0.10.0
libtpu: 0.0.40
codegen_flags: <defaults>
</compile_context>

<pallas_src>
import jax
import jax.numpy as jnp
from jax import lax
from jax.experimental import pallas as pl
from jax.experimental.pallas import tpu as pltpu


def _leaky_relu(x, slope=0.1):
    return jnp.where(x > 0, x, slope * x)


# Contract the last dim of both operands:  out[m, n] = sum_k A[m, k] * B[n, k].
_NT_DIMS = (((1,), (1,)), ((), ()))


def sense_mapping_kernel(x_ref,
                         w1_ref, w2_ref, w3_ref,
                         m1_ref, b1_ref, m2_ref, b2_ref, m3_ref, b3_ref,
                         emb_ref, which_ref):
    bf16, f32 = jnp.bfloat16, jnp.float32

    # x block is (tile_b, token_dim) f32; cast to bf16 in VMEM (VPU), no wrapper pass.
    x = x_ref[...].astype(bf16)

    # sense_map: Linear(no bias) -> Tanh, x3 — computed transposed: (feat, tile_b),
    # so every matmul has N = tile_b on the lane axis (full MXU width).
    h = jnp.tanh(lax.dot_general(w1_ref[...], x, _NT_DIMS,
                                 preferred_element_type=f32))          # (hid, tile_b)
    h = jnp.tanh(jnp.dot(w2_ref[...], h.astype(bf16),
                         preferred_element_type=f32))                  # (hid, tile_b)
    embT = jnp.tanh(jnp.dot(w3_ref[...], h.astype(bf16),
                            preferred_element_type=f32))               # (sense, tile_b)
    emb_ref[...] = embT.astype(emb_ref.dtype)                          # lane-dense store

    # mlp head: Dropout (identity in eval) -> [Linear + bias -> LeakyReLU(0.1)] x3.
    z = jnp.dot(m1_ref[...], embT.astype(bf16),
                preferred_element_type=f32) + b1_ref[...]              # (hid, tile_b)
    z = _leaky_relu(z)
    z = jnp.dot(m2_ref[...], z.astype(bf16),
                preferred_element_type=f32) + b2_ref[...]              # (hid, tile_b)
    z = _leaky_relu(z)
    z = jnp.dot(m3_ref[...], z.astype(bf16),
                preferred_element_type=f32) + b3_ref[...]              # (k, tile_b)
    z = _leaky_relu(z)

    # Softmax is monotonic and never returned -> argmax directly on the logits.
    # Senses sit on the sublane axis: cheap 8-sublane reduction, first-occurrence
    # tie-break (matching torch.argmax).  Result is a lane-dense (1, tile_b) row.
    k = z.shape[0]
    zmax = jnp.max(z, axis=0, keepdims=True)                           # (1, tile_b)
    row = lax.broadcasted_iota(jnp.int32, z.shape, 0)
    which = jnp.min(jnp.where(z == zmax, row, k), axis=0, keepdims=True)
    which_ref[...] = which.astype(jnp.int32)


def sense_mapping(x, params, *, tile_b=1024):
    B, token_dim = x.shape
    hid_dim = params["w1"].shape[0]
    sense_dim = params["w3"].shape[0]
    k_senses = params["m3"].shape[0]

    # ---- tile-size selection -------------------------------------------------
    tile_b = max(128, 128 * (tile_b // 128))            # lane-aligned tile
    b_ceil = 128 * pl.cdiv(B, 128)
    if b_ceil >= 256:
        # Cap the tile so the grid has >= 2 steps (both v7x TCs get work).
        tile_b = min(tile_b, 128 * pl.cdiv(pl.cdiv(b_ceil, 2), 128))
    else:
        tile_b = min(tile_b, b_ceil)
    B_pad = tile_b * pl.cdiv(B, tile_b)
    grid = (B_pad // tile_b,)

    if B_pad != B:
        # Pad with zero rows (masked last tile); sliced off below.
        x = jnp.pad(x, ((0, B_pad - B), (0, 0)))

    def resident(arr):
        # Weights / biases: same block every grid step -> stay VMEM-resident.
        return pl.BlockSpec(arr.shape, lambda i: (0, 0))

    # Advisory cost estimate (tiny kernel; keeps XLA scheduling honest).
    flops = 2 * B_pad * (hid_dim * token_dim + 2 * hid_dim * hid_dim
                         + 2 * sense_dim * hid_dim + k_senses * hid_dim)
    transcendentals = B_pad * (2 * hid_dim + sense_dim)
    param_bytes = sum(int(p.size) * p.dtype.itemsize for p in params.values())
    bytes_accessed = int(B_pad * (4 * token_dim + 4 * sense_dim + 4)) + param_bytes

    embT, whichT = pl.pallas_call(
        sense_mapping_kernel,
        grid=grid,
        in_specs=[
            pl.BlockSpec((tile_b, token_dim), lambda i: (i, 0)),
            resident(params["w1"]), resident(params["w2"]), resident(params["w3"]),
            resident(params["m1"]), resident(params["b1"]),
            resident(params["m2"]), resident(params["b2"]),
            resident(params["m3"]), resident(params["b3"]),
        ],
        out_specs=(
            pl.BlockSpec((sense_dim, tile_b), lambda i: (0, i)),
            pl.BlockSpec((1, tile_b), lambda i: (0, i)),
        ),
        out_shape=(
            jax.ShapeDtypeStruct((sense_dim, B_pad), jnp.float32),
            jax.ShapeDtypeStruct((1, B_pad), jnp.int32),
        ),
        compiler_params=pltpu.CompilerParams(
            dimension_semantics=("parallel",)),
        cost_estimate=pl.CostEstimate(
            flops=flops,
            transcendentals=transcendentals,
            bytes_accessed=bytes_accessed),
    )(
        x,
        params["w1"], params["w2"], params["w3"],
        params["m1"], params["b1"],
        params["m2"], params["b2"],
        params["m3"], params["b3"],
    )

    emb = embT[:, :B].T          # (B, sense_dim), module-compatible layout
    which = whichT[0, :B]        # (B,)
    return {"sense_embeddings": emb, "which_sense": which}


def init_params(key, token_dim, hid_dim, sense_dim, k_senses):
    ks = jax.random.split(key, 9)

    def unif(k, shape, fan_in, dtype):
        bound = 1.0 / jnp.sqrt(fan_in)
        return jax.random.uniform(k, shape, jnp.float32, -bound, bound).astype(dtype)

    bf16, f32 = jnp.bfloat16, jnp.float32
    # Weights stored in PyTorch (out_dim, in_dim) layout in bf16 (transposed compute);
    # biases are (out_dim, 1) f32 so the lane-axis broadcast in-kernel is free.
    return {
        "w1": unif(ks[0], (hid_dim, token_dim), token_dim, bf16),
        "w2": unif(ks[1], (hid_dim, hid_dim), hid_dim, bf16),
        "w3": unif(ks[2], (sense_dim, hid_dim), hid_dim, bf16),
        "m1": unif(ks[3], (hid_dim, sense_dim), sense_dim, bf16),
        "b1": unif(ks[4], (hid_dim, 1), sense_dim, f32),
        "m2": unif(ks[5], (hid_dim, hid_dim), hid_dim, bf16),
        "b2": unif(ks[6], (hid_dim, 1), hid_dim, f32),
        "m3": unif(ks[7], (k_senses, hid_dim), hid_dim, bf16),
        "b3": unif(ks[8], (k_senses, 1), hid_dim, f32),
    }


def _reference(x, p):
    # Pure-JAX reference with the same precision choices as the kernel.
    bf16, f32 = jnp.bfloat16, jnp.float32
    xb = x.astype(bf16)
    h = jnp.tanh(lax.dot_general(p["w1"], xb, _NT_DIMS, preferred_element_type=f32))
    h = jnp.tanh(jnp.dot(p["w2"], h.astype(bf16), preferred_element_type=f32))
    embT = jnp.tanh(jnp.dot(p["w3"], h.astype(bf16), preferred_element_type=f32))
    z = _leaky_relu(jnp.dot(p["m1"], embT.astype(bf16), preferred_element_type=f32) + p["b1"])
    z = _leaky_relu(jnp.dot(p["m2"], z.astype(bf16), preferred_element_type=f32) + p["b2"])
    z = _leaky_relu(jnp.dot(p["m3"], z.astype(bf16), preferred_element_type=f32) + p["b3"])
    # Softmax(dim=1) then argmax == argmax of the logits (monotonic).
    which = jnp.argmax(z, axis=0).astype(jnp.int32)
    return embT.T, z.T, which


if __name__ == "__main__":
    B, token_dim, hid_dim, sense_dim, k_senses = 512, 32, 32, 16, 8

    key = jax.random.PRNGKey(0)
    kx, kx2, kp = jax.random.split(key, 3)
    x = jax.random.normal(kx, (B, token_dim), jnp.float32)
    params = init_params(kp, token_dim, hid_dim, sense_dim, k_senses)

    out = sense_mapping(x, params)           # tile_b capped -> grid (2,)
    jax.block_until_ready(out)

    ref_emb, ref_z, ref_which = _reference(x, params)

    assert out["sense_embeddings"].shape == (B, sense_dim)
    assert out["which_sense"].shape == (B,)
    assert jnp.allclose(out["sense_embeddings"], ref_emb, atol=2e-3, rtol=2e-3)

    # The chosen sense must achieve (up to FP rounding ties) the max logit.
    picked = jnp.take_along_axis(ref_z, out["which_sense"][:, None], axis=1)[:, 0]
    gap = jnp.max(ref_z, axis=1) - picked
    assert jnp.all(gap <= 1e-3)
    assert jnp.mean((out["which_sense"] == ref_which).astype(jnp.float32)) > 0.99

    # Exercise the padded-last-tile path (B not divisible by tile_b).
    B2 = 300
    x2 = jax.random.normal(kx2, (B2, token_dim), jnp.float32)
    out2 = sense_mapping(x2, params, tile_b=256)
    jax.block_until_ready(out2)
    ref2_emb, ref2_z, ref2_which = _reference(x2, params)
    assert out2["sense_embeddings"].shape == (B2, sense_dim)
    assert out2["which_sense"].shape == (B2,)
    assert jnp.allclose(out2["sense_embeddings"], ref2_emb, atol=2e-3, rtol=2e-3)
    assert jnp.mean((out2["which_sense"] == ref2_which).astype(jnp.float32)) > 0.99

    print("KERNEL_OK")
</pallas_src>

<mosaic_0001>
module attributes {stable_mosaic.version = 11 : i64} {
  func.func @sense_mapping_kernel(%arg0: i32, %arg1: memref<256x32xf32, #tpu.memory_space<vmem>>, %arg2: memref<32x32xbf16, #tpu.memory_space<vmem>>, %arg3: memref<32x32xbf16, #tpu.memory_space<vmem>>, %arg4: memref<16x32xbf16, #tpu.memory_space<vmem>>, %arg5: memref<32x16xbf16, #tpu.memory_space<vmem>>, %arg6: memref<32x1xf32, #tpu.memory_space<vmem>>, %arg7: memref<32x32xbf16, #tpu.memory_space<vmem>>, %arg8: memref<32x1xf32, #tpu.memory_space<vmem>>, %arg9: memref<8x32xbf16, #tpu.memory_space<vmem>>, %arg10: memref<8x1xf32, #tpu.memory_space<vmem>>, %arg11: memref<16x256xf32, #tpu.memory_space<vmem>>, %arg12: memref<1x256xi32, #tpu.memory_space<vmem>>) attributes {dimension_semantics = [#tpu.dimension_semantics<parallel>], iteration_bounds = array<i64: 2>, scalar_prefetch = 0 : i64, scratch_operands = 0 : i64, tpu.core_type = #tpu.core_type<tc>, window_params = [{transform_indices = @transform_0, window_bounds = array<i64: 256, 32>}, {pipeline_mode = #tpu.pipeline_mode<synchronous>, transform_indices = @transform_1, window_bounds = array<i64: 32, 32>}, {pipeline_mode = #tpu.pipeline_mode<synchronous>, transform_indices = @transform_2, window_bounds = array<i64: 32, 32>}, {pipeline_mode = #tpu.pipeline_mode<synchronous>, transform_indices = @transform_3, window_bounds = array<i64: 16, 32>}, {pipeline_mode = #tpu.pipeline_mode<synchronous>, transform_indices = @transform_4, window_bounds = array<i64: 32, 16>}, {pipeline_mode = #tpu.pipeline_mode<synchronous>, transform_indices = @transform_5, window_bounds = array<i64: 32, 1>}, {pipeline_mode = #tpu.pipeline_mode<synchronous>, transform_indices = @transform_6, window_bounds = array<i64: 32, 32>}, {pipeline_mode = #tpu.pipeline_mode<synchronous>, transform_indices = @transform_7, window_bounds = array<i64: 32, 1>}, {pipeline_mode = #tpu.pipeline_mode<synchronous>, transform_indices = @transform_8, window_bounds = array<i64: 8, 32>}, {pipeline_mode = #tpu.pipeline_mode<synchronous>, transform_indices = @transform_9, window_bounds = array<i64: 8, 1>}, {transform_indices = @transform_10, window_bounds = array<i64: 16, 256>}, {transform_indices = @transform_11, window_bounds = array<i64: 1, 256>}]} {
    %c0 = arith.constant 0 : index
    %c0_0 = arith.constant 0 : index
    %0 = vector.load %arg1[%c0, %c0_0] : memref<256x32xf32, #tpu.memory_space<vmem>>, vector<256x32xf32>
    %1 = arith.truncf %0 : vector<256x32xf32> to vector<256x32xbf16>
    %c0_1 = arith.constant 0 : index
    %c0_2 = arith.constant 0 : index
    %2 = vector.load %arg2[%c0_1, %c0_2] : memref<32x32xbf16, #tpu.memory_space<vmem>>, vector<32x32xbf16>
    %cst = arith.constant dense<0.000000e+00> : vector<32x256xf32>
    %3 = tpu.matmul %2, %1, %cst {dimension_numbers = #tpu.dot_dimension_numbers<[1], [1], [0], [0], [0, 0, 1, 0], [], []>} : vector<32x32xbf16>, vector<256x32xbf16>, vector<32x256xf32> -> vector<32x256xf32>
    %4 = math.tanh %3 : vector<32x256xf32>
    %c0_3 = arith.constant 0 : index
    %c0_4 = arith.constant 0 : index
    %5 = vector.load %arg3[%c0_3, %c0_4] : memref<32x32xbf16, #tpu.memory_space<vmem>>, vector<32x32xbf16>
    %6 = arith.truncf %4 : vector<32x256xf32> to vector<32x256xbf16>
    %cst_5 = arith.constant dense<0.000000e+00> : vector<32x256xf32>
    %7 = tpu.matmul %5, %6, %cst_5 {dimension_numbers = #tpu.dot_dimension_numbers<[1], [0], [0], [1], [0, 0, 1, 1], [], []>} : vector<32x32xbf16>, vector<32x256xbf16>, vector<32x256xf32> -> vector<32x256xf32>
    %8 = math.tanh %7 : vector<32x256xf32>
    %c0_6 = arith.constant 0 : index
    %c0_7 = arith.constant 0 : index
    %9 = vector.load %arg4[%c0_6, %c0_7] : memref<16x32xbf16, #tpu.memory_space<vmem>>, vector<16x32xbf16>
    %10 = arith.truncf %8 : vector<32x256xf32> to vector<32x256xbf16>
    %cst_8 = arith.constant dense<0.000000e+00> : vector<16x256xf32>
    %11 = tpu.matmul %9, %10, %cst_8 {dimension_numbers = #tpu.dot_dimension_numbers<[1], [0], [0], [1], [0, 0, 1, 1], [], []>} : vector<16x32xbf16>, vector<32x256xbf16>, vector<16x256xf32> -> vector<16x256xf32>
    %12 = math.tanh %11 : vector<16x256xf32>
    %c0_9 = arith.constant 0 : index
    %c0_10 = arith.constant 0 : index
    %13 = vector.load %arg11[%c0_9, %c0_10] : memref<16x256xf32, #tpu.memory_space<vmem>>, vector<16x256xf32>
    tpu.vector_store %arg11[%c0_9, %c0_10], %12 {strides = array<i32>} : memref<16x256xf32, #tpu.memory_space<vmem>>, vector<16x256xf32>,
    %c0_11 = arith.constant 0 : index
    %c0_12 = arith.constant 0 : index
    %14 = vector.load %arg5[%c0_11, %c0_12] : memref<32x16xbf16, #tpu.memory_space<vmem>>, vector<32x16xbf16>
    %15 = arith.truncf %12 : vector<16x256xf32> to vector<16x256xbf16>
    %cst_13 = arith.constant dense<0.000000e+00> : vector<32x256xf32>
    %16 = tpu.matmul %14, %15, %cst_13 {dimension_numbers = #tpu.dot_dimension_numbers<[1], [0], [0], [1], [0, 0, 1, 1], [], []>} : vector<32x16xbf16>, vector<16x256xbf16>, vector<32x256xf32> -> vector<32x256xf32>
    %c0_14 = arith.constant 0 : index
    %c0_15 = arith.constant 0 : index
    %17 = vector.load %arg6[%c0_14, %c0_15] : memref<32x1xf32, #tpu.memory_space<vmem>>, vector<32x1xf32>
    %18 = vector.broadcast %17 : vector<32x1xf32> to vector<32x256xf32>
    %19 = arith.addf %16, %18 : vector<32x256xf32>
    %cst_16 = arith.constant 0.000000e+00 : f32
    %20 = vector.broadcast %cst_16 : f32 to vector<32x256xf32>
    %21 = arith.cmpf ogt, %19, %20 : vector<32x256xf32>
    %cst_17 = arith.constant 1.000000e-01 : f32
    %22 = vector.broadcast %cst_17 : f32 to vector<32x256xf32>
    %23 = arith.mulf %22, %19 : vector<32x256xf32>
    %24 = arith.select %21, %19, %23 : vector<32x256xi1>, vector<32x256xf32>
    %c0_18 = arith.constant 0 : index
    %c0_19 = arith.constant 0 : index
    %25 = vector.load %arg7[%c0_18, %c0_19] : memref<32x32xbf16, #tpu.memory_space<vmem>>, vector<32x32xbf16>
    %26 = arith.truncf %24 : vector<32x256xf32> to vector<32x256xbf16>
    %cst_20 = arith.constant dense<0.000000e+00> : vector<32x256xf32>
    %27 = tpu.matmul %25, %26, %cst_20 {dimension_numbers = #tpu.dot_dimension_numbers<[1], [0], [0], [1], [0, 0, 1, 1], [], []>} : vector<32x32xbf16>, vector<32x256xbf16>, vector<32x256xf32> -> vector<32x256xf32>
    %c0_21 = arith.constant 0 : index
    %c0_22 = arith.constant 0 : index
    %28 = vector.load %arg8[%c0_21, %c0_22] : memref<32x1xf32, #tpu.memory_space<vmem>>, vector<32x1xf32>
    %29 = vector.broadcast %28 : vector<32x1xf32> to vector<32x256xf32>
    %30 = arith.addf %27, %29 : vector<32x256xf32>
    %cst_23 = arith.constant 0.000000e+00 : f32
    %31 = vector.broadcast %cst_23 : f32 to vector<32x256xf32>
    %32 = arith.cmpf ogt, %30, %31 : vector<32x256xf32>
    %cst_24 = arith.constant 1.000000e-01 : f32
    %33 = vector.broadcast %cst_24 : f32 to vector<32x256xf32>
    %34 = arith.mulf %33, %30 : vector<32x256xf32>
    %35 = arith.select %32, %30, %34 : vector<32x256xi1>, vector<32x256xf32>
    %c0_25 = arith.constant 0 : index
    %c0_26 = arith.constant 0 : index
    %36 = vector.load %arg9[%c0_25, %c0_26] : memref<8x32xbf16, #tpu.memory_space<vmem>>, vector<8x32xbf16>
    %37 = arith.truncf %35 : vector<32x256xf32> to vector<32x256xbf16>
    %cst_27 = arith.constant dense<0.000000e+00> : vector<8x256xf32>
    %38 = tpu.matmul %36, %37, %cst_27 {dimension_numbers = #tpu.dot_dimension_numbers<[1], [0], [0], [1], [0, 0, 1, 1], [], []>} : vector<8x32xbf16>, vector<32x256xbf16>, vector<8x256xf32> -> vector<8x256xf32>
    %c0_28 = arith.constant 0 : index
    %c0_29 = arith.constant 0 : index
    %39 = vector.load %arg10[%c0_28, %c0_29] : memref<8x1xf32, #tpu.memory_space<vmem>>, vector<8x1xf32>
    %40 = vector.broadcast %39 : vector<8x1xf32> to vector<8x256xf32>
    %41 = arith.addf %38, %40 : vector<8x256xf32>
    %cst_30 = arith.constant 0.000000e+00 : f32
    %42 = vector.broadcast %cst_30 : f32 to vector<8x256xf32>
    %43 = arith.cmpf ogt, %41, %42 : vector<8x256xf32>
    %cst_31 = arith.constant 1.000000e-01 : f32
    %44 = vector.broadcast %cst_31 : f32 to vector<8x256xf32>
    %45 = arith.mulf %44, %41 : vector<8x256xf32>
    %46 = arith.select %43, %41, %45 : vector<8x256xi1>, vector<8x256xf32>
    %cst_32 = arith.constant dense<0xFF800000> : vector<256xf32>
    %47 = vector.multi_reduction <maximumf>, %46, %cst_32 [0] : vector<8x256xf32> to vector<256xf32>
    %48 = vector.shape_cast %47 : vector<256xf32> to vector<1x256xf32>
    %49 = tpu.iota {dimensions = array<i32: 0>} : vector<8x256xi32>
    %50 = vector.broadcast %48 : vector<1x256xf32> to vector<8x256xf32>
    %51 = arith.cmpf oeq, %46, %50 : vector<8x256xf32>
    %c8_i32 = arith.constant 8 : i32
    %52 = vector.broadcast %c8_i32 : i32 to vector<8x256xi32>
    %53 = arith.select %51, %49, %52 : vector<8x256xi1>, vector<8x256xi32>
    %cst_33 = arith.constant dense<2147483647> : vector<256xi32>
    %54 = vector.multi_reduction <minsi>, %53, %cst_33 [0] : vector<8x256xi32> to vector<256xi32>
    %55 = vector.shape_cast %54 : vector<256xi32> to vector<1x256xi32>
    %c0_34 = arith.constant 0 : index
    %c0_35 = arith.constant 0 : index
    %56 = vector.load %arg12[%c0_34, %c0_35] : memref<1x256xi32, #tpu.memory_space<vmem>>, vector<1x256xi32>
    tpu.vector_store %arg12[%c0_34, %c0_35], %55 {strides = array<i32>} : memref<1x256xi32, #tpu.memory_space<vmem>>, vector<1x256xi32>,
    return
  }
  func.func @transform_0(%arg0: i32) -> (i32, i32) {
    %c0_i32 = arith.constant 0 : i32
    %c0_i32_0 = arith.constant 0 : i32
    return %arg0, %c0_i32 : i32, i32
  }
  func.func @transform_1(%arg0: i32) -> (i32, i32) {
    %c0_i32 = arith.constant 0 : i32
    %c0_i32_0 = arith.constant 0 : i32
    %c0_i32_1 = arith.constant 0 : i32
    return %c0_i32, %c0_i32_0 : i32, i32
  }
  func.func @transform_2(%arg0: i32) -> (i32, i32) {
    %c0_i32 = arith.constant 0 : i32
    %c0_i32_0 = arith.constant 0 : i32
    %c0_i32_1 = arith.constant 0 : i32
    return %c0_i32, %c0_i32_0 : i32, i32
  }
  func.func @transform_3(%arg0: i32) -> (i32, i32) {
    %c0_i32 = arith.constant 0 : i32
    %c0_i32_0 = arith.constant 0 : i32
    %c0_i32_1 = arith.constant 0 : i32
    return %c0_i32, %c0_i32_0 : i32, i32
  }
  func.func @transform_4(%arg0: i32) -> (i32, i32) {
    %c0_i32 = arith.constant 0 : i32
    %c0_i32_0 = arith.constant 0 : i32
    %c0_i32_1 = arith.constant 0 : i32
    return %c0_i32, %c0_i32_0 : i32, i32
  }
  func.func @transform_5(%arg0: i32) -> (i32, i32) {
    %c0_i32 = arith.constant 0 : i32
    %c0_i32_0 = arith.constant 0 : i32
    %c0_i32_1 = arith.constant 0 : i32
    return %c0_i32, %c0_i32_0 : i32, i32
  }
  func.func @transform_6(%arg0: i32) -> (i32, i32) {
    %c0_i32 = arith.constant 0 : i32
    %c0_i32_0 = arith.constant 0 : i32
    %c0_i32_1 = arith.constant 0 : i32
    return %c0_i32, %c0_i32_0 : i32, i32
  }
  func.func @transform_7(%arg0: i32) -> (i32, i32) {
    %c0_i32 = arith.constant 0 : i32
    %c0_i32_0 = arith.constant 0 : i32
    %c0_i32_1 = arith.constant 0 : i32
    return %c0_i32, %c0_i32_0 : i32, i32
  }
  func.func @transform_8(%arg0: i32) -> (i32, i32) {
    %c0_i32 = arith.constant 0 : i32
    %c0_i32_0 = arith.constant 0 : i32
    %c0_i32_1 = arith.constant 0 : i32
    return %c0_i32, %c0_i32_0 : i32, i32
  }
  func.func @transform_9(%arg0: i32) -> (i32, i32) {
    %c0_i32 = arith.constant 0 : i32
    %c0_i32_0 = arith.constant 0 : i32
    %c0_i32_1 = arith.constant 0 : i32
    return %c0_i32, %c0_i32_0 : i32, i32
  }
  func.func @transform_10(%arg0: i32) -> (i32, i32) {
    %c0_i32 = arith.constant 0 : i32
    %c0_i32_0 = arith.constant 0 : i32
    return %c0_i32, %arg0 : i32, i32
  }
  func.func @transform_11(%arg0: i32) -> (i32, i32) {
    %c0_i32 = arith.constant 0 : i32
    %c0_i32_0 = arith.constant 0 : i32
    return %c0_i32, %arg0 : i32, i32
  }
}

</mosaic_0001>

<bundles_post_ra>
// kernel: tpu_custom_call.1
= control target key start
LH: loop header
LB: loop body
LE: loop exit
PB: predicated region body
PF: predicated region fallthrough
CT: control target
= control target key end

     0   :  { %s1690_s0 = inlined_call_operand.vmem [shape: f32[512,32], index: 0, kind: input, shape index: {}]   ;;  %s1691_s1 = inlined_call_operand.vmem [shape: bf16[32,32], index: 1, kind: input, shape index: {}]   ;;  %s1692_s2 = inlined_call_operand.vmem [shape: bf16[32,32], index: 2, kind: input, shape index: {}]   ;;  %s1693_s3 = inlined_call_operand.vmem [shape: bf16[16,32], index: 3, kind: input, shape index: {}]   ;;  %s1694_s4 = inlined_call_operand.vmem [shape: bf16[32,16], index: 4, kind: input, shape index: {}]   ;;  %s1695_s5 = inlined_call_operand.vmem [shape: f32[32,1], index: 5, kind: input, shape index: {}]   ;;  %s1696_s6 = inlined_call_operand.vmem [shape: bf16[32,32], index: 6, kind: input, shape index: {}]   ;;  %s1697_s7 = inlined_call_operand.vmem [shape: f32[32,1], index: 7, kind: input, shape index: {}]   ;;  %s1698_s8 = inlined_call_operand.vmem [shape: bf16[8,32], index: 8, kind: input, shape index: {}]   ;;  %s1699_s9 = inlined_call_operand.vmem [shape: f32[8,1], index: 9, kind: input, shape index: {}]   ;;  %s1700_s10 = inlined_call_operand.hbm [shape: f32[16,512], index: 10, kind: output, shape index: {0}]   ;;  %s1701_s11 = inlined_call_operand.hbm [shape: s32[1,512], index: 11, kind: output, shape index: {1}]  }
   0x1   :  { %1702 = sst [smem:[#allocation8_spill]] %s1690_s0 }
   0x2   :  { %1703 = sst [smem:[#allocation9_spill]] %s1691_s1 }
   0x3   :  { %1704 = sst [smem:[#allocation10_spill]] %s1692_s2 }
   0x4   :  { %1705 = sst [smem:[#allocation11_spill]] %s1693_s3 }
   0x5   :  { %1706 = sst [smem:[#allocation12_spill]] %s1694_s4 }
   0x6   :  { %17 = vsyncpa [#allocation3], 0 }
   0x7   :  { %19 = vsyncpa [#allocation3 + $0x1], 0 }
   0x8   :  { %20 = vsyncpa [#allocation5], 0 }
   0x9   :  { %22 = vsyncpa [#allocation5 + $0x1], 0  ;;  %s1455_s17 = smov 0   ;;  %s1457_s18 = smov 0  }
   0xa   :  { %s1459_s19 = smov 0   ;;  %s1461_s20 = smov 0  }
   0xb LB: > { %s1476_s21 = sadd.s32 4294967295, %s1389_s20   ;;  %s1123_s22 = sadd.s32 4294967294, %s1389_s20   ;;  %s1389_s20 = sphi %s1461_s20, %s1717_s20   ;;  %s1385_s19 = sphi %s1459_s19, %s1716_s19   ;;  %s1381_s18 = sphi %s1457_s18, %s1715_s18   ;;  %s1377_s17 = sphi %s1455_s17, %s1714_s17  }
   0xc   : > { %s1480_s23 = sadd.s32 1, %s1389_s20   ;;  %s250_s24 = sadd.s32 1, %s1385_s19 }
   0xd   : > { %s247_s25 = ssub.s32 %s1389_s20, %s1480_s23  ;;  %p260_p0 = scmp.ne.s32.totalorder %s1385_s19, %s1381_s18 }
   0xe   : > { %p248_p1 = scmp.eq.s32.totalorder %s247_s25, 0  ;;  %p261_p2 = scmp.eq.s32.totalorder %s1476_s21, 1 }
   0xf   : > { %p266_p3 = scmp.ne.s32.totalorder %s1381_s18, %s1377_s17  ;;  %p267_p4 = scmp.eq.s32.totalorder %s1123_s22, 1 }
  0x10   : > { %s1491_s26 = scalar_select %p248_p1, %s1385_s19, %s250_s24  }
  0x11   : > { %p1493_p5 = por %p261_p2, %p260_p0  ;;  %p1497_p6 = por %p267_p4, %p266_p3 }
  0x12   : > { %p1126_p7 = scmp.ge.s32.totalorder %s1389_s20, 1  ;;  %p347_p8 = scmp.lt.s32.totalorder %s1389_s20, 3 }
  0x14   : > { %p348_p9 = pnand %p1126_p7, %p347_p8 }
  0x15   : > { %s1129_s29 = sshll.u32 (!%p348_p9), %s1476_s21, 5  ;;  %s1709_s0 = sld [smem:[#allocation8_spill]] (!%p348_p9) }
  0x16   : > { %351 = sbr.rel (%p348_p9) target bundleno = 1091 (0x443), region = 60  ;;  %p393_p10 = scmp.lt.s32.totalorder (!%p348_p9), %s1129_s29, 63 }
  0x17   : > { %s1710_s1 = sld [smem:[#allocation9_spill]] (!%p348_p9)  ;;  %s1583_s15 = sand.u32 (!%p348_p9), 1, %s1381_s18  }
  0x18   : > { %s1711_s2 = sld [smem:[#allocation10_spill]] (!%p348_p9)  ;;  %s1127_s16 = sshll.u32 (!%p348_p9), %s1583_s15, 5 }
  0x19   : > { %s1712_s3 = sld [smem:[#allocation11_spill]] (!%p348_p9)  ;;  %s1203_s13 = sshll.u32 (!%p348_p9), %s1476_s21, 4 }
  0x1a   : > { %s1713_s4 = sld [smem:[#allocation12_spill]] (!%p348_p9) }
  0x1b   : > { %s1719_s29 = smov (!%p393_p10, %s1129_s29), 63  ;;  %vm463_vm0 = vcmask 261120   ;;  %vm724_vm1 = vcmask 130048  }
  0x1c   : > { %s1130_s30 = sshll.u32 %s1719_s29, 3 }
  0x1d   : > { %s1507_s14 = scalar_lea.vmem %s1709_s0, %s1130_s30  ;;  %s1592_s30 = scalar_lea.vmem [#allocation2], %s1127_s16 }
  0x1e   : > { %v415_v0 = vld [vmem:[%s1507_s14 + $0x70] sm:$0xff]  ;;  %v416_v1 = vld [vmem:[%s1507_s14 + $0x78] sm:$0xff]  ;;  %v413_v6 = vld [vmem:[%s1507_s14 + $0x60] sm:$0xff]  ;;  %s1011_s12 = sshll.u32 %s1592_s30, 4  ;;  %s1010_s16 = scalar_lea.hbm %s1700_s10, %s1203_s13  ;;  %s1012_s12 = int_to_ptr.vmem [resolvable:$true] %s1011_s12 }
  0x1f   : > { %v431_v2 = vld [vmem:[%s1507_s14 + $0xf0] sm:$0xff]  ;;  %v440_v3 = vpack.c.bf16 %v416_v1, %v415_v0  ;;  %v432_v4 = vld [vmem:[%s1507_s14 + $0xf8] sm:$0xff]  ;;  %v414_v7 = vld [vmem:[%s1507_s14 + $0x68] sm:$0xff]  ;;  %s1013_s24 = sshll.u32 %s1010_s16, 4  ;;  %s994_s0 = scalar_lea.sflag [#allocation3], %s1583_s15  ;;  %s1014_s24 = int_to_ptr.hbm [resolvable:$true] %s1013_s24 }
  0x20   : > { %v448_v5 = vpack.c.bf16 %v432_v4, %v431_v2  ;;  %v429_v9 = vld [vmem:[%s1507_s14 + $0xe0] sm:$0xff]  ;;  %v430_v10 = vld [vmem:[%s1507_s14 + $0xe8] sm:$0xff]  ;;  %v439_v12 = vpack.c.bf16 %v414_v7, %v413_v6  ;;  %v411_v16 = vld [vmem:[%s1507_s14 + $0x50] sm:$0xff] }
  0x21   : > { %v492_v8 = vsel %vm463_vm0, %v440_v3, 0  ;;  %v447_v13 = vpack.c.bf16 %v430_v10, %v429_v9  ;;  %v412_v17 = vld [vmem:[%s1507_s14 + $0x58] sm:$0xff]  ;;  %v427_v18 = vld [vmem:[%s1507_s14 + $0xd0] sm:$0xff]  ;;  %v409_v24 = vld [vmem:[%s1507_s14 + $0x40] sm:$0xff] }
  0x22   : > { %518 = vmatpush.bf16.xpose.msra.mxu0 %v492_v8  ;;  %v516_v11 = vsel %vm463_vm0, %v448_v5, 0  ;;  %v489_v14 = vsel %vm463_vm0, %v439_v12, 0  ;;  %v428_v19 = vld [vmem:[%s1507_s14 + $0xd8] sm:$0xff]  ;;  %v438_v20 = vpack.c.bf16 %v412_v17, %v411_v16  ;;  %v410_v25 = vld [vmem:[%s1507_s14 + $0x48] sm:$0xff]  ;;  %v425_v26 = vld [vmem:[%s1507_s14 + $0xc0] sm:$0xff] }
  0x23   : > { %537 = vmatpush.bf16.xpose.msra.mxu1 %v516_v11  ;;  %v513_v15 = vsel %vm463_vm0, %v447_v13, 0  ;;  %v446_v21 = vpack.c.bf16 %v428_v19, %v427_v18  ;;  %v426_v27 = vld [vmem:[%s1507_s14 + $0xc8] sm:$0xff]  ;;  %v437_v28 = vpack.c.bf16 %v410_v25, %v409_v24  ;;  %v407_v32 = vld [vmem:[%s1507_s14 + $0x30] sm:$0xff]  ;;  %v408_v33 = vld [vmem:[%s1507_s14 + $0x38] sm:$0xff] }
  0x24   : > { %v486_v22 = vsel %vm463_vm0, %v438_v20, 0  ;;  %v445_v29 = vpack.c.bf16 %v426_v27, %v425_v26  ;;  %v423_v34 = vld [vmem:[%s1507_s14 + $0xb0] sm:$0xff]  ;;  %v424_v35 = vld [vmem:[%s1507_s14 + $0xb8] sm:$0xff]  ;;  %v436_v36 = vpack.c.bf16 %v408_v33, %v407_v32  ;;  %v405_v40 = vld [vmem:[%s1507_s14 + $0x20] sm:$0xff] }
  0x25   : > { %v510_v23 = vsel %vm463_vm0, %v446_v21, 0  ;;  %v483_v30 = vsel %vm463_vm0, %v437_v28, 0  ;;  %v444_v37 = vpack.c.bf16 %v424_v35, %v423_v34  ;;  %v406_v41 = vld [vmem:[%s1507_s14 + $0x28] sm:$0xff]  ;;  %v421_v42 = vld [vmem:[%s1507_s14 + $0xa0] sm:$0xff]  ;;  %v403_v48 = vld [vmem:[%s1507_s14 + $0x10] sm:$0xff] }
  0x26   : > { %v507_v31 = vsel %vm463_vm0, %v445_v29, 0  ;;  %v480_v38 = vsel %vm463_vm0, %v436_v36, 0  ;;  %v422_v43 = vld [vmem:[%s1507_s14 + $0xa8] sm:$0xff]  ;;  %v435_v44 = vpack.c.bf16 %v406_v41, %v405_v40  ;;  %v404_v49 = vld [vmem:[%s1507_s14 + $0x18] sm:$0xff]  ;;  %v419_v50 = vld [vmem:[%s1507_s14 + $0x90] sm:$0xff] }
  0x27   : > { %v504_v39 = vsel %vm463_vm0, %v444_v37, 0  ;;  %v443_v45 = vpack.c.bf16 %v422_v43, %v421_v42  ;;  %v420_v51 = vld [vmem:[%s1507_s14 + $0x98] sm:$0xff]  ;;  %v434_v52 = vpack.c.bf16 %v404_v49, %v403_v48  ;;  %v401_v56 = vld [vmem:[%s1507_s14] sm:$0xff]  ;;  %v402_v57 = vld [vmem:[%s1507_s14 + $0x8] sm:$0xff] }
  0x28   : > { %v477_v46 = vsel %vm463_vm0, %v435_v44, 0  ;;  %v442_v53 = vpack.c.bf16 %v420_v51, %v419_v50  ;;  %v417_v58 = vld [vmem:[%s1507_s14 + $0x80] sm:$0xff]  ;;  %v418_v59 = vld [vmem:[%s1507_s14 + $0x88] sm:$0xff]  ;;  %v433_v60 = vpack.c.bf16 %v402_v57, %v401_v56  ;;  %v692_v48 = vld [vmem:[%s1695_s5 + $0x10] sm:$0xff] }
  0x29   : > { %v501_v47 = vsel %vm463_vm0, %v443_v45, 0  ;;  %v474_v54 = vsel %vm463_vm0, %v434_v52, 0  ;;  %v441_v61 = vpack.c.bf16 %v418_v59, %v417_v58  ;;  %v1194_v0 = vld [vmem:[%s1710_s1] sm:$0xff]  ;;  %v1195_v1 = vld [vmem:[%s1710_s1 + $0x8] sm:$0xff]  ;;  %v1391_v45 = vmov 0   ;;  %s1309_s1 = sshra.s32 %s1014_s24, 4  ;;  %s1310_s1 = int_to_ptr.hbm [resolvable:$true] %s1309_s1 }
  0x2a   : > { %519 = vmatpush.bf16.xpose.msra.mxu0 %v489_v14  ;;  %v498_v55 = vsel %vm463_vm0, %v442_v53, 0  ;;  %v471_v62 = vsel %vm463_vm0, %v433_v60, 0  ;;  %v1198_v44 = vld [vmem:[%s1712_s3] sm:$0xff]  ;;  %1253 = vset.pattern.permute.xlu1 %v1391_v45  ;;  %s1311_s25 = scalar_lea.hbm %s1310_s1, 32  ;;  %p1316_p0 = scmp.lt.s32.totalorder %s1310_s1, %s1700_s10 }
  0x2b   : > { %538 = vmatpush.bf16.xpose.msra.mxu1 %v513_v15  ;;  %v495_v63 = vsel %vm463_vm0, %v441_v61, 0  ;;  %1252 = vset.pattern.permute.xlu0 %v1391_v45  ;;  %v690_v49 = vld [vmem:[%s1695_s5] sm:$0xff]  ;;  %p1312_p11 = scmp.ne.s32.totalorder %s1310_s1, %s1311_s25 }
  0x2c   : > { %1254 = vset.pattern.permute.xlu2 %v1391_v45  ;;  %706 = vperm.xlu0 %1252, %v692_v48   ;;  %v1199_v60 = vld [vmem:[%s1713_s4] sm:$0xff] }
  0x2d   : > { %696 = vperm.xlu1 %1253, %v690_v49   ;;  %v801_v61 = vld [vmem:[%s1697_s7] sm:$0xff]  ;;  %p1313_p12 = pnand %p1312_p11, %p1493_p5 }
  0x2f   : > { %p1314_p13 = pneg %p1313_p12 }
  0x32   : > { %520 = vmatpush.bf16.xpose.msra.mxu0 %v486_v22  ;;  %v1196_v22 = vld [vmem:[%s1711_s2] sm:$0xff] }
  0x33   : > { %539 = vmatpush.bf16.xpose.msra.mxu1 %v510_v23  ;;  %v1197_v23 = vld [vmem:[%s1711_s2 + $0x8] sm:$0xff] }
  0x3a   : > { %521 = vmatpush.bf16.xpose.msra.mxu0 %v483_v30 }
  0x3b   : > { %540 = vmatpush.bf16.xpose.msra.mxu1 %v507_v31 }
  0x42   : > { %522 = vmatpush.bf16.xpose.msra.mxu0 %v480_v38 }
  0x43   : > { %541 = vmatpush.bf16.xpose.msra.mxu1 %v504_v39 }
  0x4a   : > { %523 = vmatpush.bf16.xpose.msra.mxu0 %v477_v46 }
  0x4b   : > { %542 = vmatpush.bf16.xpose.msra.mxu1 %v501_v47 }
  0x52   : > { %524 = vmatpush.bf16.xpose.msra.mxu0 %v474_v54  ;;  %v693_v54 = vld [vmem:[%s1695_s5 + $0x18] sm:$0xff] }
  0x53   : > { %543 = vmatpush.bf16.xpose.msra.mxu1 %v498_v55  ;;  %v691_v55 = vld [vmem:[%s1695_s5 + $0x8] sm:$0xff]  ;;  %711 = vperm.xlu0 %1252, %v693_v54  }
  0x54   : > { %701 = vperm.xlu1 %1253, %v691_v55  }
  0x5a   : > { %525 = vmatpush.bf16.xpose.msra.mxu0 %v471_v62  ;;  %v802_v62 = vld [vmem:[%s1697_s7 + $0x8] sm:$0xff] }
  0x5b   : > { %544 = vmatpush.bf16.xpose.msra.mxu1 %v495_v63  ;;  %807 = vperm.xlu0 %1252, %v801_v61   ;;  %v1200_v63 = vld [vmem:[%s1713_s4 + $0x8] sm:$0xff] }
  0x5c   : > { %812 = vperm.xlu1 %1253, %v802_v62  }
  0x61   : > { %1139 = vmatmul.msk.bf16.vlgmr.msra.gmra.mxu0 %vm463_vm0, %v1194_v0 }
  0x62   : > { %1141 = vmatmul.msk.bf16.vlgmr.msra.gmra.mxu1 %vm463_vm0, %v1194_v0 }
  0x71   : > { %1140 = vmatmul.msk.bf16.gmra.mxu0 %vm463_vm0, %v1195_v1 }
  0x72   : > { %1142 = vmatmul.msk.bf16.gmra.mxu1 %vm463_vm0, %v1195_v1 }
  0xde   : > { %v527_v2 = vpop.f32.mrf.mxu0 }
  0xdf   : > { %v546_v3 = vpop.f32.mrf.mxu1 }
  0xe6   : > { %v529_v4 = vpop.f32.mrf.mxu0 }
  0xe7   : > { %v548_v5 = vpop.f32.mrf.mxu1 }
  0xee   : > { %v532_v6 = vpop.f32.mrf.mxu0 }
  0xef   : > { %v551_v7 = vpop.f32.mrf.mxu1  ;;  %1255 = vtanh.f32 %v532_v6 }
  0xf0   : > { %1257 = vtanh.f32 %v551_v7 }
  0xf5   : > { %v1256_v10 = vpop.eup %1255 }
  0xf6   : > { %v534_v8 = vpop.f32.mrf.mxu0  ;;  %v1258_v11 = vpop.eup %1257 }
  0xf7   : > { %1259 = vtanh.f32 %v534_v8  ;;  %v553_v9 = vpop.f32.mrf.mxu1 }
  0xf8   : > { %1261 = vtanh.f32 %v553_v9 }
  0xf9   : > { %1263 = vtanh.f32 %v529_v4  ;;  %v697_v4 = vpop.permute.xlu1 %696 }
  0xfa   : > { %1265 = vtanh.f32 %v548_v5  ;;  %v707_v5 = vpop.permute.xlu0 %706 }
  0xfb   : > { %1267 = vtanh.f32 %v527_v2 }
  0xfc   : > { %1269 = vtanh.f32 %v546_v3 }
  0xfd   : > { %v1260_v12 = vpop.eup %1259 }
  0xfe   : > { %v1262_v13 = vpop.eup %1261  ;;  %v570_v14 = vpack.c.bf16 %v1260_v12, %v1256_v10 }
  0xff   : > { %v1264_v15 = vpop.eup %1263  ;;  %v571_v16 = vpack.c.bf16 %v1262_v13, %v1258_v11 }
 0x100   : > { %v1266_v17 = vpop.eup %1265  ;;  %594 = vmatpush.bf16.msra.mxu2 %v570_v14 }
 0x101   : > { %v1268_v18 = vpop.eup %1267  ;;  %613 = vmatpush.bf16.msra.mxu3 %v571_v16  ;;  %v702_v8 = vpop.permute.xlu1 %701  ;;  %v803_v16 = vld [vmem:[%s1697_s7 + $0x10] sm:$0xff] }
 0x102   : > { %v1270_v19 = vpop.eup %1269  ;;  %v568_v20 = vpack.c.bf16 %v1264_v15, %v1268_v18  ;;  %v712_v13 = vpop.permute.xlu0 %711  ;;  %817 = vperm.xlu2 %1254, %v803_v16  }
 0x103   : > { %v569_v21 = vpack.c.bf16 %v1266_v17, %v1270_v19 }
 0x104   : > { %595 = vmatpush.bf16.msra.mxu2 %v568_v20 }
 0x105   : > { %614 = vmatpush.bf16.msra.mxu3 %v569_v21 }
 0x107   : > { %1151 = vmatmul.msk.bf16.vlgmr.msra.gmra.mxu2 %vm463_vm0, %v1196_v22 }
 0x108   : > { %1153 = vmatmul.msk.bf16.vlgmr.msra.gmra.mxu3 %vm463_vm0, %v1196_v22 }
 0x109   : > { %v813_v54 = vpop.permute.xlu1 %812 }
 0x117   : > { %1152 = vmatmul.msk.bf16.gmra.mxu2 %vm463_vm0, %v1197_v23 }
 0x118   : > { %1154 = vmatmul.msk.bf16.gmra.mxu3 %vm463_vm0, %v1197_v23 }
 0x15c   : > { %v818_v49 = vpop.permute.xlu2 %817 }
 0x18a   : > { %v597_v24 = vpop.f32.mrf.mxu2 }
 0x18b   : > { %v616_v25 = vpop.f32.mrf.mxu3 }
 0x192   : > { %v599_v26 = vpop.f32.mrf.mxu2 }
 0x193   : > { %v618_v27 = vpop.f32.mrf.mxu3 }
 0x19a   : > { %v602_v28 = vpop.f32.mrf.mxu2 }
 0x19b   : > { %v621_v29 = vpop.f32.mrf.mxu3  ;;  %1271 = vtanh.f32 %v602_v28 }
 0x19c   : > { %1273 = vtanh.f32 %v621_v29 }
 0x1a1   : > { %v1272_v32 = vpop.eup %1271 }
 0x1a2   : > { %v604_v30 = vpop.f32.mrf.mxu2  ;;  %v1274_v33 = vpop.eup %1273 }
 0x1a3   : > { %1275 = vtanh.f32 %v604_v30  ;;  %v623_v31 = vpop.f32.mrf.mxu3 }
 0x1a4   : > { %1277 = vtanh.f32 %v623_v31 }
 0x1a5   : > { %1279 = vtanh.f32 %v599_v26 }
 0x1a6   : > { %1281 = vtanh.f32 %v618_v27 }
 0x1a7   : > { %1283 = vtanh.f32 %v597_v24 }
 0x1a8   : > { %1285 = vtanh.f32 %v616_v25 }
 0x1a9   : > { %v1276_v34 = vpop.eup %1275 }
 0x1aa   : > { %v1278_v35 = vpop.eup %1277  ;;  %v638_v36 = vpack.c.bf16 %v1276_v34, %v1272_v32  ;;  %v804_v34 = vld [vmem:[%s1697_s7 + $0x18] sm:$0xff] }
 0x1ab   : > { %v1280_v37 = vpop.eup %1279  ;;  %v639_v38 = vpack.c.bf16 %v1278_v35, %v1274_v33  ;;  %822 = vperm.xlu2 %1254, %v804_v34  }
 0x1ac   : > { %v1282_v39 = vpop.eup %1281  ;;  %654 = vmatpush.bf16.msrb.mxu2 %v638_v36 }
 0x1ad   : > { %v1284_v40 = vpop.eup %1283  ;;  %668 = vmatpush.bf16.msrb.mxu3 %v639_v38 }
 0x1ae   : > { %v1286_v41 = vpop.eup %1285  ;;  %v636_v42 = vpack.c.bf16 %v1280_v37, %v1284_v40 }
 0x1af   : > { %v637_v43 = vpack.c.bf16 %v1282_v39, %v1286_v41 }
 0x1b0   : > { %655 = vmatpush.bf16.msrb.mxu2 %v636_v42  ;;  %v1201_v42 = vld [vmem:[%s1696_s6] sm:$0xff] }
 0x1b1   : > { %669 = vmatpush.bf16.msrb.mxu3 %v637_v43  ;;  %v908_v43 = vld [vmem:[%s1699_s9] sm:$0xff] }
 0x1b3   : > { %1159 = vmatmul.msk.bf16.vlgmr.msrb.gmra.mxu2 %vm463_vm0, %v1198_v44  ;;  %911 = vperm.xlu2 %1254, %v908_v43  }
 0x1b4   : > { %1160 = vmatmul.msk.bf16.vlgmr.msrb.gmra.mxu3 %vm463_vm0, %v1198_v44  ;;  %v1202_v44 = vld [vmem:[%s1696_s6 + $0x8] sm:$0xff] }
 0x236   : > { %v657_v46 = vpop.f32.mrf.mxu2 }
 0x237   : > { %1287 = vtanh.f32 %v657_v46  ;;  %v671_v47 = vpop.f32.mrf.mxu3 }
 0x238   : > { %1289 = vtanh.f32 %v671_v47 }
 0x23d   : > { %v1288_v50 = vpop.eup %1287 }
 0x23e   : > { %v1290_v51 = vpop.eup %1289  ;;  %680 = vst [vmem:[%s1592_s30] sm:$0xff] %v1288_v50  ;;  %v659_v52 = vpop.f32.mrf.mxu2 }
 0x23f   : > { %681 = vst [vmem:[%s1592_s30 + $0x8] sm:$0xff] %v1290_v51  ;;  %1291 = vtanh.f32 %v659_v52  ;;  %v673_v53 = vpop.f32.mrf.mxu3  ;;  %v808_v52 = vpop.permute.xlu0 %807 }
 0x240   : > { %1293 = vtanh.f32 %v673_v53 }
 0x245   : > { %v1292_v56 = vpop.eup %1291 }
 0x246   : > { %v1294_v57 = vpop.eup %1293  ;;  %682 = vst [vmem:[%s1592_s30 + $0x10] sm:$0xff] %v1292_v56  ;;  %v688_v58 = vpack.c.bf16 %v1292_v56, %v1288_v50 }
 0x247   : > { %683 = vst [vmem:[%s1592_s30 + $0x18] sm:$0xff] %v1294_v57  ;;  %v689_v59 = vpack.c.bf16 %v1294_v57, %v1290_v51  ;;  %s1315_s30 = scalar_lea.hbm %s1700_s10, 64 }
 0x248   : > { %738 = vmatpush.bf16.msra.mxu2 %v688_v58  ;;  %v823_v58 = vpop.permute.xlu2 %822  ;;  %p1317_p1 = scmp.lt.s32.totalorder %s1315_s30, %s1311_s25 }
 0x249   : > { %757 = vmatpush.bf16.msra.mxu3 %v689_v59 }
 0x24a   : > { %p1318_p2 = por %p1317_p1, %p1316_p0 }
 0x24b   : > { %1169 = vmatmul.msk.bf16.vlgmr.msra.gmra.mxu2 %vm724_vm1, %v1199_v60 }
 0x24c   : > { %1171 = vmatmul.msk.bf16.vlgmr.msra.gmra.mxu3 %vm724_vm1, %v1199_v60  ;;  %p1319_p3 = pnand %p1318_p2, %p1314_p13 }
 0x25b   : > { %1170 = vmatmul.msk.bf16.gmra.mxu2 %vm724_vm1, %v1200_v63 }
 0x25c   : > { %1172 = vmatmul.msk.bf16.gmra.mxu3 %vm724_vm1, %v1200_v63 }
 0x2ce   : > { %v740_v0 = vpop.f32.mrf.mxu2 }
 0x2cf   : > { %v759_v1 = vpop.f32.mrf.mxu3  ;;  %v741_v10 = vadd.f32 %v740_v0, %v697_v4 }
 0x2d0   : > { %v760_v17 = vadd.f32 %v759_v1, %v697_v4 }
 0x2d1   : > { %vm769_vm2 = vcmp.gt.f32.partialorder %v741_v10, 0.0  ;;  %v777_v27 = vmul.f32 0.1, %v741_v10 }
 0x2d2   : > { %v778_v30 = vmul.f32 0.1, %v760_v17  ;;  %vm770_vm9 = vcmp.gt.f32.partialorder %v760_v17, 0.0 }
 0x2d3   : > { %v785_v38 = vsel %vm769_vm2, %v741_v10, %v777_v27 }
 0x2d4   : > { %v786_v40 = vsel %vm770_vm9, %v760_v17, %v778_v30 }
 0x2d6   : > { %v742_v2 = vpop.f32.mrf.mxu2 }
 0x2d7   : > { %v761_v3 = vpop.f32.mrf.mxu3  ;;  %v743_v12 = vadd.f32 %v742_v2, %v702_v8 }
 0x2d8   : > { %v762_v14 = vadd.f32 %v761_v3, %v702_v8 }
 0x2d9   : > { %v779_v23 = vmul.f32 0.1, %v743_v12  ;;  %vm771_vm6 = vcmp.gt.f32.partialorder %v743_v12, 0.0 }
 0x2da   : > { %v780_v25 = vmul.f32 0.1, %v762_v14  ;;  %vm772_vm8 = vcmp.gt.f32.partialorder %v762_v14, 0.0 }
 0x2db   : > { %v787_v36 = vsel %vm771_vm6, %v743_v12, %v779_v23 }
 0x2dc   : > { %v788_v37 = vsel %vm772_vm8, %v762_v14, %v780_v25  ;;  %v797_v39 = vpack.c.bf16 %v787_v36, %v785_v38 }
 0x2dd   : > { %v798_v41 = vpack.c.bf16 %v788_v37, %v786_v40 }
 0x2de   : > { %v745_v6 = vpop.f32.mrf.mxu2 }
 0x2df   : > { %v764_v7 = vpop.f32.mrf.mxu3  ;;  %v746_v9 = vadd.f32 %v745_v6, %v707_v5 }
 0x2e0   : > { %v765_v11 = vadd.f32 %v764_v7, %v707_v5 }
 0x2e1   : > { %v781_v18 = vmul.f32 0.1, %v746_v9  ;;  %vm773_vm3 = vcmp.gt.f32.partialorder %v746_v9, 0.0 }
 0x2e2   : > { %v782_v21 = vmul.f32 0.1, %v765_v11  ;;  %vm774_vm4 = vcmp.gt.f32.partialorder %v765_v11, 0.0 }
 0x2e3   : > { %v789_v28 = vsel %vm773_vm3, %v746_v9, %v781_v18 }
 0x2e4   : > { %v790_v31 = vsel %vm774_vm4, %v765_v11, %v782_v21  ;;  %v903_v21 = vld [vmem:[%s1698_s8] sm:$0xf] }
 0x2e6   : > { %v747_v15 = vpop.f32.mrf.mxu2 }
 0x2e7   : > { %v748_v19 = vadd.f32 %v747_v15, %v712_v13  ;;  %v766_v20 = vpop.f32.mrf.mxu3 }
 0x2e8   : > { %v767_v22 = vadd.f32 %v766_v20, %v712_v13 }
 0x2e9   : > { %vm775_vm5 = vcmp.gt.f32.partialorder %v748_v19, 0.0  ;;  %v783_v24 = vmul.f32 0.1, %v748_v19 }
 0x2ea   : > { %vm776_vm7 = vcmp.gt.f32.partialorder %v767_v22, 0.0  ;;  %v784_v26 = vmul.f32 0.1, %v767_v22 }
 0x2eb   : > { %v791_v29 = vsel %vm775_vm5, %v748_v19, %v783_v24 }
 0x2ec   : > { %v799_v32 = vpack.c.bf16 %v791_v29, %v789_v28  ;;  %v792_v33 = vsel %vm776_vm7, %v767_v22, %v784_v26 }
 0x2ed   : > { %v800_v35 = vpack.c.bf16 %v792_v33, %v790_v31 }
 0x2ee   : > { %847 = vmatpush.bf16.msrb.mxu2 %v799_v32 }
 0x2ef   : > { %866 = vmatpush.bf16.msrb.mxu3 %v800_v35 }
 0x2f2   : > { %848 = vmatpush.bf16.msrb.mxu2 %v797_v39 }
 0x2f3   : > { %867 = vmatpush.bf16.msrb.mxu3 %v798_v41 }
 0x2f5   : > { %1181 = vmatmul.msk.bf16.vlgmr.msrb.gmra.mxu2 %vm463_vm0, %v1201_v42 }
 0x2f6   : > { %1183 = vmatmul.msk.bf16.vlgmr.msrb.gmra.mxu3 %vm463_vm0, %v1201_v42 }
 0x305   : > { %1182 = vmatmul.msk.bf16.gmra.mxu2 %vm463_vm0, %v1202_v44 }
 0x306   : > { %1184 = vmatmul.msk.bf16.gmra.mxu3 %vm463_vm0, %v1202_v44 }
 0x378   : > { %v850_v45 = vpop.f32.mrf.mxu2 }
 0x379   : > { %v869_v46 = vpop.f32.mrf.mxu3  ;;  %v851_v55 = vadd.f32 %v850_v45, %v808_v52 }
 0x37a   : > { %v870_v61 = vadd.f32 %v869_v46, %v808_v52 }
 0x37b   : > { %v887_v1 = vmul.f32 0.1, %v851_v55  ;;  %vm879_vm15 = vcmp.gt.f32.partialorder %v851_v55, 0.0 }
 0x37c   : > { %v888_v10 = vmul.f32 0.1, %v870_v61  ;;  %vm880_vm2 = vcmp.gt.f32.partialorder %v870_v61, 0.0 }
 0x37d   : > { %v895_v17 = vsel %vm879_vm15, %v851_v55, %v887_v1 }
 0x37e   : > { %v896_v19 = vsel %vm880_vm2, %v870_v61, %v888_v10 }
 0x380   : > { %v852_v47 = vpop.f32.mrf.mxu2 }
 0x381   : > { %v871_v48 = vpop.f32.mrf.mxu3  ;;  %v853_v57 = vadd.f32 %v852_v47, %v813_v54 }
 0x382   : > { %v872_v59 = vadd.f32 %v871_v48, %v813_v54 }
 0x383   : > { %v889_v4 = vmul.f32 0.1, %v853_v57  ;;  %vm881_vm14 = vcmp.gt.f32.partialorder %v853_v57, 0.0 }
 0x384   : > { %v890_v6 = vmul.f32 0.1, %v872_v59  ;;  %vm882_vm1 = vcmp.gt.f32.partialorder %v872_v59, 0.0 }
 0x385   : > { %v897_v15 = vsel %vm881_vm14, %v853_v57, %v889_v4 }
 0x386   : > { %v898_v16 = vsel %vm882_vm1, %v872_v59, %v890_v6  ;;  %v904_v18 = vpack.c.bf16 %v897_v15, %v895_v17 }
 0x387   : > { %v905_v20 = vpack.c.bf16 %v898_v16, %v896_v19 }
 0x388   : > { %v855_v50 = vpop.f32.mrf.mxu2 }
 0x389   : > { %v874_v51 = vpop.f32.mrf.mxu3  ;;  %v856_v53 = vadd.f32 %v855_v50, %v818_v49 }
 0x38a   : > { %v875_v56 = vadd.f32 %v874_v51, %v818_v49 }
 0x38b   : > { %v891_v62 = vmul.f32 0.1, %v856_v53  ;;  %vm883_vm10 = vcmp.gt.f32.partialorder %v856_v53, 0.0 }
 0x38c   : > { %v892_v2 = vmul.f32 0.1, %v875_v56  ;;  %vm884_vm12 = vcmp.gt.f32.partialorder %v875_v56, 0.0 }
 0x38d   : > { %v899_v8 = vsel %vm883_vm10, %v856_v53, %v891_v62 }
 0x38e   : > { %v900_v12 = vsel %vm884_vm12, %v875_v56, %v892_v2 }
 0x390   : > { %v857_v60 = vpop.f32.mrf.mxu2 }
 0x391   : > { %v858_v63 = vadd.f32 %v857_v60, %v823_v58  ;;  %v876_v0 = vpop.f32.mrf.mxu3 }
 0x392   : > { %v877_v3 = vadd.f32 %v876_v0, %v823_v58 }
 0x393   : > { %v893_v5 = vmul.f32 0.1, %v858_v63  ;;  %vm885_vm11 = vcmp.gt.f32.partialorder %v858_v63, 0.0 }
 0x394   : > { %v894_v7 = vmul.f32 0.1, %v877_v3  ;;  %vm886_vm13 = vcmp.gt.f32.partialorder %v877_v3, 0.0 }
 0x395   : > { %v901_v9 = vsel %vm885_vm11, %v858_v63, %v893_v5 }
 0x396   : > { %v906_v11 = vpack.c.bf16 %v901_v9, %v899_v8  ;;  %v902_v13 = vsel %vm886_vm13, %v877_v3, %v894_v7 }
 0x397   : > { %v907_v14 = vpack.c.bf16 %v902_v13, %v900_v12 }
 0x398   : > { %923 = vmatpush.bf16.msrb.mxu0 %v906_v11 }
 0x399   : > { %936 = vmatpush.bf16.msrb.mxu1 %v907_v14 }
 0x39c   : > { %924 = vmatpush.bf16.msrb.mxu0 %v904_v18 }
 0x39d   : > { %937 = vmatpush.bf16.msrb.mxu1 %v905_v20 }
 0x39f   : > { %1185 = vmatmul.msk.bf16.vlgmr.msrb.gmra.mxu0 %vm463_vm0, %v903_v21 }
 0x3a0   : > { %1186 = vmatmul.msk.bf16.vlgmr.msrb.gmra.mxu1 %vm463_vm0, %v903_v21 }
 0x3a1   : > { %1322 = shalt.err (!%p1319_p3)
}
 0x3a2   : > { %s1392_s13 = smov 256   ;;  %s1393_s14 = smov 512   ;;  %v912_v22 = vpop.permute.xlu2 %911  ;;  %v961_v39 = vlaneseq  ;;  %vm986_vm12 = vcmask 1040384  }
 0x3a3   : > { %s1394_s22 = smov 16   ;;  %s1191_s1 = sshll.u32 %s1476_s21, 1 }
 0x3a4   : > { %1204 = dma.vmem_to_hbm [thread:$0]  (%p1493_p5), %s1012_s12, 512, %s1014_s24, %s994_s0, %s1392_s13, %s1393_s14, %s1394_s22   ;;  %v962_v44 = vshrl.u32 %v961_v39, 7  ;;  %vm990_vm13 = vcmp.lt.s32.totalorder %v961_v39, 256 }
 0x3a5   : > { %s1128_s0 = sshll.u32 %s1583_s15, 1  ;;  %s1026_s4 = scalar_lea.hbm %s1701_s11, %s1191_s1 }
 0x3a6   : > { %s391_s12 = scalar_lea.vmem [#allocation4], %s1128_s0  ;;  %s1030_s24 = sshll.u32 %s1026_s4, 4  ;;  %s1031_s24 = int_to_ptr.hbm [resolvable:$true] %s1030_s24 }
 0x3a7   : > { %s1028_s16 = sshll.u32 %s391_s12, 4  ;;  %s999_s21 = scalar_lea.sflag [#allocation5], %s1583_s15  ;;  %s1029_s16 = int_to_ptr.vmem [resolvable:$true] %s1028_s16 }
 0x3a8   : > { %s1337_s25 = sshra.s32 %s1031_s24, 4  ;;  %s1343_s14 = scalar_lea.hbm %s1701_s11, 4  ;;  %s1338_s25 = int_to_ptr.hbm [resolvable:$true] %s1337_s25 }
 0x3a9   : > { %s1339_s29 = scalar_lea.hbm %s1338_s25, 2  ;;  %p1344_p9 = scmp.lt.s32.totalorder %s1338_s25, %s1701_s11 }
 0x3aa   : > { %p1340_p4 = scmp.ne.s32.totalorder %s1338_s25, %s1339_s29  ;;  %p1345_p10 = scmp.lt.s32.totalorder %s1343_s14, %s1339_s29 }
 0x3ac   : > { %p1341_p7 = pnand %p1340_p4, %p1493_p5  ;;  %p1346_p11 = por %p1345_p10, %p1344_p9 }
 0x3ae   : > { %p1342_p8 = pneg %p1341_p7 }
 0x3b0   : > { %p1347_p12 = pnand %p1346_p11, %p1342_p8 }
 0x41c   : > { %v926_v23 = vpop.f32.mrf.mxu0 }
 0x41d   : > { %v927_v24 = vadd.f32 %v926_v23, %v912_v22  ;;  %v939_v25 = vpop.f32.mrf.mxu1 }
 0x41e   : > { %v940_v26 = vadd.f32 %v939_v25, %v912_v22 }
 0x41f   : > { %vm943_vm0 = vcmp.gt.f32.partialorder %v927_v24, 0.0  ;;  %v945_v27 = vmul.f32 0.1, %v927_v24 }
 0x420   : > { %vm944_vm3 = vcmp.gt.f32.partialorder %v940_v26, 0.0  ;;  %v946_v28 = vmul.f32 0.1, %v940_v26 }
 0x421   : > { %v947_v29 = vsel %vm943_vm0, %v927_v24, %v945_v27 }
 0x422   : > { %v949_v30 = vrot.slane %v947_v29, 4  ;;  %v948_v31 = vsel %vm944_vm3, %v940_v26, %v946_v28 }
 0x423   : > { %v955_v32 = vrot.slane %v948_v31, 4 }
 0x424   : > { %v950_v33 = vmax.f32 %v947_v29, %v949_v30  ;;  %v928_v34 = vpop.f32.mrf.mxu0 }
 0x425   : > { %v956_v35 = vmax.f32 %v948_v31, %v955_v32  ;;  %v941_v36 = vpop.f32.mrf.mxu1 }
 0x426   : > { %v951_v37 = vrot.slane %v950_v33, 2 }
 0x427   : > { %v957_v38 = vrot.slane %v956_v35, 2 }
 0x428   : > { %v952_v40 = vmax.f32 %v950_v33, %v951_v37 }
 0x429   : > { %v958_v41 = vmax.f32 %v956_v35, %v957_v38 }
 0x42a   : > { %v953_v42 = vrot.slane %v952_v40, 1 }
 0x42b   : > { %v959_v43 = vrot.slane %v958_v41, 1 }
 0x42c   : > { %v954_v45 = vmax.f32 %v952_v40, %v953_v42 }
 0x42d   : > { %v960_v46 = vmax.f32 %v958_v41, %v959_v43 }
 0x42e   : > { %vm963_vm4 = vcmp.eq.f32.partialorder %v947_v29, %v954_v45 }
 0x42f   : > { %vm964_vm5 = vcmp.eq.f32.partialorder %v948_v31, %v960_v46  ;;  %v965_v47 = vsel %vm963_vm4, %v962_v44, 8 }
 0x430   : > { %v966_v48 = vsel %vm964_vm5, %v962_v44, 8  ;;  %v967_v49 = vrot.slane %v965_v47, 4 }
 0x431   : > { %v976_v50 = vrot.slane %v966_v48, 4 }
 0x432   : > { %vm968_vm6 = vcmp.lt.s32.totalorder %v965_v47, %v967_v49 }
 0x433   : > { %v969_v51 = vsel %vm968_vm6, %v965_v47, %v967_v49  ;;  %vm977_vm7 = vcmp.lt.s32.totalorder %v966_v48, %v976_v50 }
 0x434   : > { %v970_v52 = vrot.slane %v969_v51, 2  ;;  %v978_v53 = vsel %vm977_vm7, %v966_v48, %v976_v50 }
 0x435   : > { %v979_v54 = vrot.slane %v978_v53, 2 }
 0x436   : > { %vm971_vm8 = vcmp.lt.s32.totalorder %v969_v51, %v970_v52 }
 0x437   : > { %v972_v55 = vsel %vm971_vm8, %v969_v51, %v970_v52  ;;  %vm980_vm9 = vcmp.lt.s32.totalorder %v978_v53, %v979_v54 }
 0x438   : > { %v973_v56 = vrot.slane %v972_v55, 1  ;;  %v981_v57 = vsel %vm980_vm9, %v978_v53, %v979_v54 }
 0x439   : > { %v982_v58 = vrot.slane %v981_v57, 1 }
 0x43a   : > { %vm974_vm10 = vcmp.lt.s32.totalorder %v972_v55, %v973_v56 }
 0x43b   : > { %vm983_vm11 = vcmp.lt.s32.totalorder %v981_v57, %v982_v58  ;;  %v975_v61 = vsel %vm974_vm10, %v972_v55, %v973_v56 }
 0x43c   : > { %v984_v59 = vsel %vm983_vm11, %v981_v57, %v982_v58 }
 0x43d   : > { %v985_v60 = vrot.slane %v984_v59, 7 }
 0x43f   : > { %v987_v62 = vsel %vm986_vm12, %v975_v61, %v985_v60 }
 0x440   : > { %992 = vst.msk [vmem:[%s391_s12] sm:$0x3] %vm990_vm13, %v987_v62 }
 0x441   : > { %1350 = shalt.err (!%p1347_p12)
}
 0x442   : > { %1205 = dma.vmem_to_hbm [thread:$0]  (%p1493_p5), %s1029_s16, 32, %s1031_s24, %s999_s21  }
 0x443 PF: > { %p1215_p13 = scmp.ge.s32.totalorder %s1389_s20, 2  ;;  %s1042_s15 = sand.u32 1, %s1377_s17  }
 0x444   : > { %s1043_s1 = scalar_lea.sflag [#allocation3], %s1042_s15 }
 0x445   : > { %p1209_p0 = pnand %p1215_p13, %p1497_p6 }
 0x447   : > { %p1210_p1 = pneg %p1209_p0 }
 0x449   : > { %1368 = dma.done.wait (%p1210_p1), %s1043_s1, 512  }
 0x44a   : > { %1370 = vsyncadd (%p1210_p1), %s1043_s1, 4294966784  ;;  %s1053_s2 = scalar_lea.sflag [#allocation5], %s1042_s15 }
 0x44b   : > { %1372 = dma.done.wait (%p1210_p1), %s1053_s2, 32  }
 0x44c   : > { %1374 = vsyncadd (%p1210_p1), %s1053_s2, 4294967264  ;;  %p25_p5 = scmp.ge.s32.totalorder %s1480_s23, 4   ;;  %s1714_s17 = smov %s1381_s18 }
 0x44d   : > { %s1715_s18 = smov %s1385_s19  ;;  %s1716_s19 = smov %s1491_s26 }
 0x44e   : > { %s1717_s20 = smov %s1480_s23  ;;  %27 = sbr.rel (!%p25_p5) target bundleno = 11 (0xb), region = 112 }
 0x453   :  { %1059 = vsyncpa [#allocation3], 1 }
 0x454   :  { %1061 = vsyncpa [#allocation3 + $0x1], 1 }
 0x455   :  { %1062 = vsyncpa [#allocation5], 1 }
 0x456   :  { %1064 = vsyncpa [#allocation5 + $0x1], 1 }

</bundles_post_ra>
